<compile_context>
chip_gen: v5e
topology: v5e:2x2
jax: 0.10.0
libtpu: 0.0.40
codegen_flags: <defaults>
</compile_context>

<pallas_src>
import numpy as np
import jax
import jax.numpy as jnp
from jax.experimental import pallas as pl
from jax.experimental.pallas import tpu as pltpu


def _pick_tile(dim, target, mult):
    """Largest tile <= target that divides `dim` and is a multiple of `mult`;
    falls back to the full dim for small / non-divisible sizes.
    NOTE: for very large non-divisible dims this falls back to the full dim
    (could exceed VMEM) - assert divisibility upstream at real GPT2 shapes."""
    if dim <= target:
        return dim
    t = (target // mult) * mult
    while t >= mult:
        if dim % t == 0:
            return t
        t -= mult
    return dim


# ------------------------------------------------------------------
# Kernel 1: stacked 2-layer MLP (Linear -> ReLU -> Linear).
# grid = (L, N//TN).  W1/W2/b1/b2 block indices depend only on L, so each
# layer's weights are fetched once per layer.  The 4H reduction of the
# second matmul is chunked in-kernel with static slices.
# ------------------------------------------------------------------
def _make_mlp_kernel(n_chunks, cf, compute_dtype):
    def kernel(x_ref, w1_ref, b1_ref, w2_ref, b2_ref, o_ref, acc_ref):
        x = x_ref[0].astype(compute_dtype)                      # (TN, H)
        acc_ref[...] = jnp.zeros_like(acc_ref)
        for c in range(n_chunks):                               # static, small
            lo = c * cf
            hi = lo + cf
            h = jnp.dot(x, w1_ref[0, :, lo:hi],
                        preferred_element_type=jnp.float32)     # (TN, CF) f32
            h = jnp.maximum(h + b1_ref[0, :, lo:hi], 0.0)       # ReLU on VPU
            acc_ref[...] += jnp.dot(h.astype(compute_dtype),
                                    w2_ref[0, lo:hi, :],
                                    preferred_element_type=jnp.float32)
        o_ref[0] = (acc_ref[...] + b2_ref[0]).astype(o_ref.dtype)
    return kernel


def mlp_stack(x, w1, b1, w2, b2, *, tile_n=512, chunk_f=1024,
              compute_dtype=jnp.bfloat16, out_dtype=jnp.float32):
    """Apply layer-l MLP to x[l] for every l.  x: [L, N, H] -> [L, N, H]."""
    L, N, H = x.shape
    H4 = w1.shape[-1]
    TN = _pick_tile(N, tile_n, 16)
    CF = _pick_tile(H4, chunk_f, 128)
    n_chunks = H4 // CF
    nt = N // TN

    # Cast weights only if the caller did not already provide compute_dtype
    # (recommended: cast once at parameter-init time, as done in __main__).
    w1c = w1 if w1.dtype == compute_dtype else w1.astype(compute_dtype)
    w2c = w2 if w2.dtype == compute_dtype else w2.astype(compute_dtype)
    b1f = b1.astype(jnp.float32).reshape(L, 1, H4)
    b2f = b2.astype(jnp.float32).reshape(L, 1, H)
    # x is NOT cast here: the kernel casts in-VMEM (saves a full HBM pass).

    wbytes = np.dtype(compute_dtype).itemsize
    obytes = np.dtype(out_dtype).itemsize
    xbytes = np.dtype(x.dtype).itemsize

    # VMEM budget: double-buffered blocks + acc scratch + hidden-chunk temps.
    blk = (TN * H * xbytes + H * H4 * wbytes + H4 * 4
           + H4 * H * wbytes + H * 4 + TN * H * obytes)
    vmem_need = 2 * blk + TN * H * 4 + TN * CF * (4 + wbytes)
    vmem_limit = int(min(max(vmem_need * 1.4, 32 << 20), 56 << 20))

    flops = 4 * L * N * H * H4          # two GEMMs per layer
    bytes_accessed = (x.size * xbytes + w1c.size * wbytes + w2c.size * wbytes
                      + b1f.size * 4 + b2f.size * 4 + L * N * H * obytes)

    return pl.pallas_call(
        _make_mlp_kernel(n_chunks, CF, compute_dtype),
        out_shape=jax.ShapeDtypeStruct((L, N, H), out_dtype),
        grid_spec=pltpu.PrefetchScalarGridSpec(
            num_scalar_prefetch=0,
            grid=(L, nt),                                        # no 4H grid axis
            in_specs=[
                pl.BlockSpec((1, TN, H), lambda l, n: (l, n, 0)),   # x
                pl.BlockSpec((1, H, H4), lambda l, n: (l, 0, 0)),   # W1 (per layer)
                pl.BlockSpec((1, 1, H4), lambda l, n: (l, 0, 0)),   # b1
                pl.BlockSpec((1, H4, H), lambda l, n: (l, 0, 0)),   # W2 (per layer)
                pl.BlockSpec((1, 1, H),  lambda l, n: (l, 0, 0)),   # b2
            ],
            out_specs=pl.BlockSpec((1, TN, H), lambda l, n: (l, n, 0)),
            scratch_shapes=[pltpu.VMEM((TN, H), jnp.float32)],
        ),
        # Both axes are independent; on v7x megacore shards over L*nt tiles
        # (even at GPT2-12 layers), v5e/v6e iterate sequentially.
        compiler_params=pltpu.CompilerParams(
            dimension_semantics=("parallel", "parallel"),
            vmem_limit_bytes=vmem_limit),
        cost_estimate=pl.CostEstimate(
            flops=flops, transcendentals=0, bytes_accessed=bytes_accessed),
    )(x, w1c, b1f, w2c, b2f)


# ------------------------------------------------------------------
# Kernel 2: kl_div reduction, numerically-stable rewrite of
#   0.5 * sum((exp(qv) + (qm - pm)^2)/exp(pv) - 1 + (pv - qv))
#   = 0.5 * sum(exp(qv - pv) + (qm - pm)^2 * exp(-pv) - 1 + (pv - qv))
# Inputs are lane-densified into one stacked (4, rows, C) array.
# ------------------------------------------------------------------
def _kl_kernel(s_ref, o_ref):
    @pl.when(pl.program_id(0) == 0)
    def _():
        o_ref[...] = jnp.zeros_like(o_ref)

    pm = s_ref[0]
    pv = s_ref[1]
    qm = s_ref[2]
    qv = s_ref[3]
    d = qm - pm
    kl = jnp.exp(qv - pv) + d * d * jnp.exp(-pv) - 1.0 + (pv - qv)
    o_ref[...] += 0.5 * jnp.sum(kl)


def kl_div(prior_mu, prior_var, posterior_mu, posterior_var, *,
           lane_cols=512, tile_r=256):
    S = prior_mu.size
    C = lane_cols if S >= lane_cols else 128
    rows = pl.cdiv(S, C * 8) * 8          # rows is a multiple of 8
    Sp = rows * C

    def prep(a):
        a = a.reshape(-1).astype(jnp.float32)
        # zero-padding contributes exp(0) + 0 - 1 + 0 = 0 to the KL sum.
        return jnp.pad(a, (0, Sp - S)).reshape(rows, C)

    stacked = jnp.stack(
        [prep(a) for a in (prior_mu, prior_var, posterior_mu, posterior_var)])

    TR = _pick_tile(rows, tile_r, 8)
    out = pl.pallas_call(
        _kl_kernel,
        out_shape=jax.ShapeDtypeStruct((1, 1), jnp.float32),
        grid=(rows // TR,),
        in_specs=[pl.BlockSpec((4, TR, C), lambda i: (0, i, 0))],
        out_specs=pl.BlockSpec((1, 1), lambda i: (0, 0)),
        compiler_params=pltpu.CompilerParams(
            dimension_semantics=("arbitrary",)),
    )(stacked)
    return out[0, 0]


# ------------------------------------------------------------------
# Plain-JAX references (mirror the kernel's bf16 casts / f32 accumulation)
# ------------------------------------------------------------------
def _mlp_ref(x, w1, b1, w2, b2):
    xb = x.astype(jnp.bfloat16).astype(jnp.float32)
    w1b = w1.astype(jnp.bfloat16).astype(jnp.float32)
    w2b = w2.astype(jnp.bfloat16).astype(jnp.float32)
    h = jnp.maximum(jnp.einsum("lnh,lhf->lnf", xb, w1b) + b1, 0.0)
    hb = h.astype(jnp.bfloat16).astype(jnp.float32)
    return jnp.einsum("lnf,lfh->lnh", hb, w2b) + b2


def _kl_ref(pm, pv, qm, qv):
    kl = (jnp.exp(qv) + (qm - pm) ** 2) / jnp.exp(pv) - 1.0 + (pv - qv)
    return 0.5 * jnp.sum(kl)


# TODO(synk): base_model (GPT2LMHeadImplicitModel) forward / generate,
# tokenizer, LatentEncoder / DeterministicEncoder / Decoder are external
# pretrained modules with no self-contained definition; not implemented.

if __name__ == "__main__":
    key = jax.random.PRNGKey(0)

    # Small shapes consistent with the module: GPT2-like stack with
    # num_layers=4, hidden_size=32, batch=2, seq=8; plus 3 starter MLPs.
    B, T, H = 2, 8, 32
    L, L_START = 4, 3
    H4 = 4 * H
    N = B * T
    Z = 32  # NP latent dim for the kl_div check

    keys = jax.random.split(key, 16)

    def init_mlp(k, n_layers):
        k1, k2, k3, k4 = jax.random.split(k, 4)
        w1 = 0.02 * jax.random.normal(k1, (n_layers, H, H4), jnp.float32)
        b1 = 0.02 * jax.random.normal(k2, (n_layers, 1, H4), jnp.float32)
        w2 = 0.02 * jax.random.normal(k3, (n_layers, H4, H), jnp.float32)
        b2 = 0.02 * jax.random.normal(k4, (n_layers, 1, H), jnp.float32)
        return w1, b1, w2, b2

    mlp_w1, mlp_b1, mlp_w2, mlp_b2 = init_mlp(keys[0], L)          # self.mlps
    st_w1, st_b1, st_w2, st_b2 = init_mlp(keys[1], L_START)        # self.starter_mlps

    # Cast weights to the MXU compute dtype ONCE, at "init time".
    mlp_w1_c, mlp_w2_c = mlp_w1.astype(jnp.bfloat16), mlp_w2.astype(jnp.bfloat16)
    st_w1_c, st_w2_c = st_w1.astype(jnp.bfloat16), st_w2.astype(jnp.bfloat16)

    # teacher_states: one (B, T, H) state per transformer layer.
    teacher_states = jax.random.normal(keys[2], (L, B, T, H), jnp.float32)
    ts_flat = teacher_states.reshape(L, N, H)                      # [L, N, H]

    # hidden states fed to the starter MLPs inside forward_student.
    starter_in = jax.random.normal(keys[3], (L_START, B, T, H), jnp.float32)
    si_flat = starter_in.reshape(L_START, N, H)

    # ---- run the Pallas MLP kernels (teacher_states = [mlps[l](ts[l])]) ----
    proj_teacher = jax.block_until_ready(
        mlp_stack(ts_flat, mlp_w1_c, mlp_b1, mlp_w2_c, mlp_b2))
    proj_starter = jax.block_until_ready(
        mlp_stack(si_flat, st_w1_c, st_b1, st_w2_c, st_b2))

    ref_teacher = _mlp_ref(ts_flat, mlp_w1, mlp_b1, mlp_w2, mlp_b2)
    ref_starter = _mlp_ref(si_flat, st_w1, st_b1, st_w2, st_b2)
    assert jnp.allclose(proj_teacher, ref_teacher, atol=2e-3, rtol=2e-2), (
        float(jnp.max(jnp.abs(proj_teacher - ref_teacher))))
    assert jnp.allclose(proj_starter, ref_starter, atol=2e-3, rtol=2e-2), (
        float(jnp.max(jnp.abs(proj_starter - ref_starter))))

    # ---- run the Pallas kl_div kernel ----
    prior_mu = jax.random.normal(keys[4], (B, Z), jnp.float32)
    prior_var = 0.1 * jax.random.normal(keys[5], (B, Z), jnp.float32)
    post_mu = jax.random.normal(keys[6], (B, Z), jnp.float32)
    post_var = 0.1 * jax.random.normal(keys[7], (B, Z), jnp.float32)

    kl = jax.block_until_ready(kl_div(prior_mu, prior_var, post_mu, post_var))
    kl_ref = _kl_ref(prior_mu, prior_var, post_mu, post_var)
    assert jnp.allclose(kl, kl_ref, atol=1e-3, rtol=1e-3), (float(kl), float(kl_ref))

    print("KERNEL_OK")
</pallas_src>

<mosaic_0001>
module attributes {stable_mosaic.version = 11 : i64} {
  func.func @kernel(%arg0: i32, %arg1: i32, %arg2: memref<1x16x32xf32, #tpu.memory_space<vmem>>, %arg3: memref<1x32x128xbf16, #tpu.memory_space<vmem>>, %arg4: memref<1x1x128xf32, #tpu.memory_space<vmem>>, %arg5: memref<1x128x32xbf16, #tpu.memory_space<vmem>>, %arg6: memref<1x1x32xf32, #tpu.memory_space<vmem>>, %arg7: memref<1x16x32xf32, #tpu.memory_space<vmem>>, %arg8: memref<16x32xf32, #tpu.memory_space<vmem>>) attributes {dimension_semantics = [#tpu.dimension_semantics<parallel>, #tpu.dimension_semantics<parallel>], iteration_bounds = array<i64: 4, 1>, scalar_prefetch = 0 : i64, scratch_operands = 1 : i64, tpu.core_type = #tpu.core_type<tc>, window_params = [{transform_indices = @transform_0, window_bounds = array<i64: 1, 16, 32>}, {transform_indices = @transform_1, window_bounds = array<i64: 1, 32, 128>}, {transform_indices = @transform_2, window_bounds = array<i64: 1, 1, 128>}, {transform_indices = @transform_3, window_bounds = array<i64: 1, 128, 32>}, {transform_indices = @transform_4, window_bounds = array<i64: 1, 1, 32>}, {transform_indices = @transform_5, window_bounds = array<i64: 1, 16, 32>}]} {
    %c0 = arith.constant 0 : index
    %c0_0 = arith.constant 0 : index
    %c0_1 = arith.constant 0 : index
    %0 = vector.load %arg2[%c0, %c0_0, %c0_1] : memref<1x16x32xf32, #tpu.memory_space<vmem>>, vector<1x16x32xf32>
    %1 = vector.shape_cast %0 : vector<1x16x32xf32> to vector<16x32xf32>
    %2 = arith.truncf %1 : vector<16x32xf32> to vector<16x32xbf16>
    %cst = arith.constant 0.000000e+00 : f32
    %3 = vector.broadcast %cst : f32 to vector<16x32xf32>
    %c0_2 = arith.constant 0 : index
    %c0_3 = arith.constant 0 : index
    %4 = vector.load %arg8[%c0_2, %c0_3] : memref<16x32xf32, #tpu.memory_space<vmem>>, vector<16x32xf32>
    tpu.vector_store %arg8[%c0_2, %c0_3], %3 {strides = array<i32>} : memref<16x32xf32, #tpu.memory_space<vmem>>, vector<16x32xf32>,
    %c0_4 = arith.constant 0 : index
    %c0_5 = arith.constant 0 : index
    %c0_6 = arith.constant 0 : index
    %5 = vector.load %arg3[%c0_4, %c0_5, %c0_6] : memref<1x32x128xbf16, #tpu.memory_space<vmem>>, vector<1x32x128xbf16>
    %6 = vector.shape_cast %5 : vector<1x32x128xbf16> to vector<32x128xbf16>
    %cst_7 = arith.constant dense<0.000000e+00> : vector<16x128xf32>
    %7 = tpu.matmul %2, %6, %cst_7 {dimension_numbers = #tpu.dot_dimension_numbers<[1], [0], [0], [1], [0, 0, 1, 1], [], []>} : vector<16x32xbf16>, vector<32x128xbf16>, vector<16x128xf32> -> vector<16x128xf32>
    %c0_8 = arith.constant 0 : index
    %c0_9 = arith.constant 0 : index
    %c0_10 = arith.constant 0 : index
    %8 = vector.load %arg4[%c0_8, %c0_9, %c0_10] : memref<1x1x128xf32, #tpu.memory_space<vmem>>, vector<1x1x128xf32>
    %9 = vector.shape_cast %8 : vector<1x1x128xf32> to vector<1x128xf32>
    %10 = vector.broadcast %9 : vector<1x128xf32> to vector<16x128xf32>
    %11 = arith.addf %7, %10 : vector<16x128xf32>
    %cst_11 = arith.constant 0.000000e+00 : f32
    %12 = vector.broadcast %cst_11 : f32 to vector<16x128xf32>
    %13 = arith.maximumf %11, %12 : vector<16x128xf32>
    %c0_12 = arith.constant 0 : index
    %c0_13 = arith.constant 0 : index
    %14 = vector.load %arg8[%c0_12, %c0_13] : memref<16x32xf32, #tpu.memory_space<vmem>>, vector<16x32xf32>
    %15 = arith.truncf %13 : vector<16x128xf32> to vector<16x128xbf16>
    %c0_14 = arith.constant 0 : index
    %c0_15 = arith.constant 0 : index
    %c0_16 = arith.constant 0 : index
    %16 = vector.load %arg5[%c0_14, %c0_15, %c0_16] : memref<1x128x32xbf16, #tpu.memory_space<vmem>>, vector<1x128x32xbf16>
    %17 = vector.shape_cast %16 : vector<1x128x32xbf16> to vector<128x32xbf16>
    %cst_17 = arith.constant dense<0.000000e+00> : vector<16x32xf32>
    %18 = tpu.matmul %15, %17, %cst_17 {dimension_numbers = #tpu.dot_dimension_numbers<[1], [0], [0], [1], [0, 0, 1, 1], [], []>} : vector<16x128xbf16>, vector<128x32xbf16>, vector<16x32xf32> -> vector<16x32xf32>
    %19 = arith.addf %14, %18 : vector<16x32xf32>
    %c0_18 = arith.constant 0 : index
    %c0_19 = arith.constant 0 : index
    %20 = vector.load %arg8[%c0_18, %c0_19] : memref<16x32xf32, #tpu.memory_space<vmem>>, vector<16x32xf32>
    tpu.vector_store %arg8[%c0_18, %c0_19], %19 {strides = array<i32>} : memref<16x32xf32, #tpu.memory_space<vmem>>, vector<16x32xf32>,
    %c0_20 = arith.constant 0 : index
    %c0_21 = arith.constant 0 : index
    %21 = vector.load %arg8[%c0_20, %c0_21] : memref<16x32xf32, #tpu.memory_space<vmem>>, vector<16x32xf32>
    %c0_22 = arith.constant 0 : index
    %c0_23 = arith.constant 0 : index
    %c0_24 = arith.constant 0 : index
    %22 = vector.load %arg6[%c0_22, %c0_23, %c0_24] : memref<1x1x32xf32, #tpu.memory_space<vmem>>, vector<1x1x32xf32>
    %23 = vector.shape_cast %22 : vector<1x1x32xf32> to vector<1x32xf32>
    %24 = vector.broadcast %23 : vector<1x32xf32> to vector<16x32xf32>
    %25 = arith.addf %21, %24 : vector<16x32xf32>
    %c0_25 = arith.constant 0 : index
    %c0_26 = arith.constant 0 : index
    %c0_27 = arith.constant 0 : index
    %26 = vector.load %arg7[%c0_25, %c0_26, %c0_27] : memref<1x16x32xf32, #tpu.memory_space<vmem>>, vector<1x16x32xf32>
    %27 = vector.shape_cast %26 : vector<1x16x32xf32> to vector<16x32xf32>
    %28 = vector.shape_cast %25 : vector<16x32xf32> to vector<1x16x32xf32>
    tpu.vector_store %arg7[%c0_25, %c0_26, %c0_27], %28 {strides = array<i32>} : memref<1x16x32xf32, #tpu.memory_space<vmem>>, vector<1x16x32xf32>,
    return
  }
  func.func @transform_0(%arg0: i32, %arg1: i32) -> (i32, i32, i32) {
    %c0_i32 = arith.constant 0 : i32
    %c0_i32_0 = arith.constant 0 : i32
    return %arg0, %arg1, %c0_i32 : i32, i32, i32
  }
  func.func @transform_1(%arg0: i32, %arg1: i32) -> (i32, i32, i32) {
    %c0_i32 = arith.constant 0 : i32
    %c0_i32_0 = arith.constant 0 : i32
    %c0_i32_1 = arith.constant 0 : i32
    return %arg0, %c0_i32, %c0_i32_0 : i32, i32, i32
  }
  func.func @transform_2(%arg0: i32, %arg1: i32) -> (i32, i32, i32) {
    %c0_i32 = arith.constant 0 : i32
    %c0_i32_0 = arith.constant 0 : i32
    %c0_i32_1 = arith.constant 0 : i32
    return %arg0, %c0_i32, %c0_i32_0 : i32, i32, i32
  }
  func.func @transform_3(%arg0: i32, %arg1: i32) -> (i32, i32, i32) {
    %c0_i32 = arith.constant 0 : i32
    %c0_i32_0 = arith.constant 0 : i32
    %c0_i32_1 = arith.constant 0 : i32
    return %arg0, %c0_i32, %c0_i32_0 : i32, i32, i32
  }
  func.func @transform_4(%arg0: i32, %arg1: i32) -> (i32, i32, i32) {
    %c0_i32 = arith.constant 0 : i32
    %c0_i32_0 = arith.constant 0 : i32
    %c0_i32_1 = arith.constant 0 : i32
    return %arg0, %c0_i32, %c0_i32_0 : i32, i32, i32
  }
  func.func @transform_5(%arg0: i32, %arg1: i32) -> (i32, i32, i32) {
    %c0_i32 = arith.constant 0 : i32
    %c0_i32_0 = arith.constant 0 : i32
    return %arg0, %arg1, %c0_i32 : i32, i32, i32
  }
}

</mosaic_0001>

<bundles_post_ra>
// kernel: tpu_custom_call.1
= control target key start
LH: loop header
LB: loop body
LE: loop exit
PB: predicated region body
PF: predicated region fallthrough
CT: control target
= control target key end

     0   :  { %10 = vsyncpa [#allocation4], 0  ;;  %s969_s0 = inlined_call_operand.vmem [shape: f32[4,16,32], index: 0, kind: input, shape index: {}]   ;;  %s970_s1 = inlined_call_operand.vmem [shape: bf16[4,32,128], index: 1, kind: input, shape index: {}]   ;;  %s971_s2 = inlined_call_operand.vmem [shape: f32[4,1,128], index: 2, kind: input, shape index: {}]   ;;  %s972_s3 = inlined_call_operand.vmem [shape: bf16[4,128,32], index: 3, kind: input, shape index: {}]   ;;  %s973_s4 = inlined_call_operand.vmem [shape: f32[4,1,32], index: 4, kind: input, shape index: {}]   ;;  %s974_s5 = inlined_call_operand.hbm [shape: f32[4,16,32], index: 5, kind: output, shape index: {}]  }
   0x1   :  { %12 = vsyncpa [#allocation4 + $0x1], 0  ;;  %s847_s18 = smov 0   ;;  %s849_s19 = smov 0  }
   0x2   :  { %s851_s20 = smov 0   ;;  %s853_s21 = smov 0  }
   0x3   :  { %s855_s22 = smov 0   ;;  %s857_s23 = smov 0  }
   0x4 LB: > { %s602_s24 = sadd.s32 4294967295, %s812_s23   ;;  %s603_s25 = sadd.s32 4294967294, %s812_s23   ;;  %s812_s23 = sphi %s857_s23, %s18_s23   ;;  %s808_s22 = sphi %s855_s22, %s981_s22   ;;  %s804_s21 = sphi %s853_s21, %s980_s21   ;;  %s800_s20 = sphi %s851_s20, %s979_s20   ;;  %s796_s19 = sphi %s849_s19, %s978_s19   ;;  %s792_s18 = sphi %s847_s18, %s977_s18  }
   0x5   : > { %s30_s26 = sadd.s32 1, %s808_s22  ;;  %s171_s27 = sadd.s32 1, %s800_s20 }
   0x6   : > { %p32_p0 = scmp.ge.s32.totalorder %s30_s26, 4  ;;  %p181_p1 = scmp.ne.s32.totalorder %s800_s20, %s796_s19 }
   0x7   : > { %p182_p2 = scmp.eq.s32.totalorder %s602_s24, 3  ;;  %p187_p3 = scmp.ne.s32.totalorder %s796_s19, %s792_s18 }
   0x8   : > { %s983_s26 = smov (%p32_p0, %s30_s26), 0  ;;  %p188_p5 = scmp.eq.s32.totalorder %s603_s25, 3 }
   0x9   : > { %p887_p4 = por %p182_p2, %p181_p1  ;;  %s166_s29 = ssub.s32 %s808_s22, %s983_s26 }
   0xa   : > { %p606_p6 = scmp.ge.s32.totalorder %s812_s23, 1  ;;  %p169_p7 = scmp.eq.s32.totalorder %s166_s29, 0 }
   0xb   : > { %p894_p8 = por %p188_p5, %p187_p3  ;;  %p247_p9 = scmp.lt.s32.totalorder %s812_s23, 5 }
   0xc   : > { %s900_s6 = scalar_select %p169_p7, %s800_s20, %s171_s27  }
   0xd   : > { %p248_p10 = pnand %p606_p6, %p247_p9 }
   0xe   : > { %p296_p11 = scmp.lt.s32.totalorder (!%p248_p10), %s804_s21, 3  ;;  %s292_s11 = sand.u32 (!%p248_p10), 1, %s796_s19  }
   0xf   : > { %251 = sbr.rel (%p248_p10) target bundleno = 322 (0x142), region = 40  ;;  %s673_s13 = sshll.u32 (!%p248_p10), %s804_s21, 4 }
  0x14   : > { %s904_s7 = scalar_select %p296_p11, %s804_s21, 3  ;;  %vm326_vm0 = vcmask 261120   ;;  %v814_v13 = vmov 0.0  }
  0x15   : > { %327 = vst.msk [vmem:[#allocation2] sm:$0xff] %vm326_vm0, %v814_v13  ;;  %s464_s21 = scalar_lea.sflag [#allocation4], %s292_s11 }
  0x16   : > { %s660_s8 = sshll.u32 %s904_s7, 4  ;;  %s662_s9 = sshll.u32 %s904_s7, 6  ;;  %328 = vst.msk [vmem:[#allocation2 + $0x8] sm:$0xff] %vm326_vm0, %v814_v13 }
  0x17   : > { %s309_s12 = scalar_lea.vmem %s970_s1, %s660_s8  ;;  %s317_s15 = scalar_lea.vmem %s972_s3, %s662_s9 }
  0x18   : > { %v664_v0 = vld [vmem:[%s309_s12 + $0x8] sm:$0xff]  ;;  %s303_s24 = scalar_lea.vmem %s969_s0, %s660_s8  ;;  %v672_v1 = vld [vmem:[%s317_s15 + $0x38] sm:$0xff]  ;;  %v663_v2 = vld [vmem:[%s309_s12] sm:$0xff]  ;;  %s312_s29 = scalar_lea.vmem %s971_s2, %s904_s7 }
  0x19   : > { %v323_v3 = vld [vmem:[%s303_s24] sm:$0xff]  ;;  %358 = vmatpush.bf16.msra.mxu0 %v664_v0  ;;  %v324_v4 = vld [vmem:[%s303_s24 + $0x8] sm:$0xff]  ;;  %435 = vmatpush.bf16.msra.mxu1 %v672_v1  ;;  %v671_v5 = vld [vmem:[%s317_s15 + $0x30] sm:$0xff]  ;;  %s320_s10 = scalar_lea.vmem %s973_s4, %s904_s7  ;;  %s607_s12 = sshll.u32 %s292_s11, 4 }
  0x1a   : > { %v325_v6 = vpack.c.bf16 %v324_v4, %v323_v3  ;;  %v670_v7 = vld [vmem:[%s317_s15 + $0x28] sm:$0xff]  ;;  %v669_v8 = vld [vmem:[%s317_s15 + $0x20] sm:$0xff]  ;;  %v668_v9 = vld [vmem:[%s317_s15 + $0x18] sm:$0xff]  ;;  %s477_s7 = scalar_lea.hbm %s974_s5, %s673_s13  ;;  %s294_s16 = scalar_lea.vmem [#allocation3], %s607_s12 }
  0x1b   : > { %v667_v10 = vld [vmem:[%s317_s15 + $0x10] sm:$0xff]  ;;  %v666_v11 = vld [vmem:[%s317_s15 + $0x8] sm:$0xff]  ;;  %v665_v12 = vld [vmem:[%s317_s15] sm:$0xff]  ;;  %s478_s17 = sshll.u32 %s294_s16, 4  ;;  %s480_s24 = sshll.u32 %s477_s7, 4  ;;  %s479_s17 = int_to_ptr.vmem [resolvable:$true] %s478_s17  ;;  %s481_s24 = int_to_ptr.hbm [resolvable:$true] %s480_s24 }
  0x1c   : > { %v732_v15 = vld [vmem:[%s312_s29] ss:$0 sm:$0xff]  ;;  %s748_s25 = sshra.s32 %s481_s24, 4  ;;  %s754_s9 = scalar_lea.hbm %s974_s5, 64  ;;  %s749_s25 = int_to_ptr.hbm [resolvable:$true] %s748_s25 }
  0x1d   : > { %359 = vmatpush.bf16.msra.mxu0 %v663_v2  ;;  %436 = vmatpush.bf16.msra.mxu1 %v671_v5  ;;  %v368_v22 = vld [vmem:[#allocation2] sm:$0xff]  ;;  %v369_v25 = vld [vmem:[#allocation2 + $0x8] sm:$0xff]  ;;  %s750_s27 = scalar_lea.hbm %s749_s25, 16  ;;  %p755_p1 = scmp.lt.s32.totalorder %s749_s25, %s974_s5 }
  0x1e   : > { %v733_v26 = vld [vmem:[%s320_s10] ss:$0 sm:$0xff]  ;;  %p751_p12 = scmp.ne.s32.totalorder %s749_s25, %s750_s27  ;;  %p756_p2 = scmp.lt.s32.totalorder %s754_s9, %s750_s27 }
  0x20   : > { %622 = vmatmul.msk.bf16.vlgmr.msra.gmra.mxu0 %vm326_vm0, %v325_v6  ;;  %p752_p13 = pnand %p751_p12, %p887_p4  ;;  %p757_p3 = por %p756_p2, %p755_p1 }
  0x21   : > { %437 = vmatpush.bf16.msra.mxu1 %v670_v7 }
  0x22   : > { %p753_p0 = pneg %p752_p13 }
  0x24   : > { %p758_p5 = pnand %p757_p3, %p753_p0 }
  0x25   : > { %438 = vmatpush.bf16.msra.mxu1 %v669_v8 }
  0x29   : > { %439 = vmatpush.bf16.msra.mxu1 %v668_v9 }
  0x2d   : > { %440 = vmatpush.bf16.msra.mxu1 %v667_v10 }
  0x31   : > { %441 = vmatpush.bf16.msra.mxu1 %v666_v11 }
  0x35   : > { %442 = vmatpush.bf16.msra.mxu1 %v665_v12 }
  0x9d   : > { %v361_v14 = vpop.f32.mrf.mxu0 }
  0x9e   : > { %v362_v16 = vadd.f32 %v732_v15, %v361_v14 }
  0xa0   : > { %v366_v19 = vmax.f32 %v362_v16, 0.0 }
  0xa5   : > { %v363_v17 = vpop.f32.mrf.mxu0 }
  0xa6   : > { %v364_v18 = vadd.f32 %v732_v15, %v363_v17 }
  0xa8   : > { %v367_v20 = vmax.f32 %v364_v18, 0.0 }
  0xaa   : > { %v370_v21 = vpack.c.bf16 %v367_v20, %v366_v19 }
  0xac   : > { %443 = vmatmul.bf16.vlgmr.msra.gmra.mxu1 %v370_v21 }
 0x129   : > { %v444_v23 = vpop.f32.mrf.mxu1 }
 0x12a   : > { %v449_v24 = vadd.f32 %v444_v23, %v368_v22 }
 0x12c   : > { %451 = vst.msk [vmem:[#allocation2] sm:$0xff] %vm326_vm0, %v449_v24 }
 0x131   : > { %v446_v27 = vpop.f32.mrf.mxu1 }
 0x132   : > { %v450_v28 = vadd.f32 %v446_v27, %v369_v25 }
 0x133   : > { %v453_v29 = vld [vmem:[#allocation2] sm:$0xff] }
 0x134   : > { %452 = vst.msk [vmem:[#allocation2 + $0x8] sm:$0xff] %vm326_vm0, %v450_v28  ;;  %v459_v30 = vadd.f32 %v733_v26, %v453_v29 }
 0x136   : > { %461 = vst.msk [vmem:[%s294_s16] sm:$0xff] %vm326_vm0, %v459_v30 }
 0x13b   : > { %v454_v31 = vld [vmem:[#allocation2 + $0x8] sm:$0xff] }
 0x13c   : > { %v460_v32 = vadd.f32 %v733_v26, %v454_v31 }
 0x13e   : > { %462 = vst.msk [vmem:[%s294_s16 + $0x8] sm:$0xff] %vm326_vm0, %v460_v32 }
 0x13f   : > { %761 = shalt.err (!%p758_p5)
}
 0x140   : > { %s815_s11 = smov 128   ;;  %s816_s13 = smov 8  }
 0x141   : > { %674 = dma.vmem_to_hbm [thread:$0]  (%p887_p4), %s479_s17, 256, %s481_s24, %s464_s21, %s815_s11, %s815_s11, %s816_s13  }
 0x142 PF: > { %p680_p6 = scmp.ge.s32.totalorder %s812_s23, 2  ;;  %s495_s14 = sand.u32 1, %s792_s18  }
 0x143   : > { %s496_s15 = scalar_lea.sflag [#allocation4], %s495_s14 }
 0x144   : > { %p677_p7 = pnand %p680_p6, %p894_p8 }
 0x146   : > { %p678_p9 = pneg %p677_p7 }
 0x148   : > { %787 = dma.done.wait (%p678_p9), %s496_s15, 256  }
 0x149   : > { %789 = vsyncadd (%p678_p9), %s496_s15, 4294967040  ;;  %s18_s23 = sadd.s32 1, %s812_s23   ;;  %s977_s18 = smov %s796_s19 }
 0x14a   : > { %p15_p10 = scmp.ge.s32.totalorder %s18_s23, 6   ;;  %s978_s19 = smov %s800_s20 }
 0x14b   : > { %s979_s20 = smov %s900_s6  ;;  %s980_s21 = smov %s808_s22 }
 0x14c   : > { %s981_s22 = smov %s983_s26  ;;  %17 = sbr.rel (!%p15_p10) target bundleno = 4 (0x4), region = 87 }
 0x151   :  { %502 = vsyncpa [#allocation4], 1 }
 0x152   :  { %504 = vsyncpa [#allocation4 + $0x1], 1 }

</bundles_post_ra>
